<compile_context>
chip_gen: v5e
topology: v5e:2x2
jax: 0.10.0
libtpu: 0.0.40
codegen_flags: <defaults>
</compile_context>

<pallas_src>
import jax
import jax.numpy as jnp
from jax.experimental import pallas as pl
from jax.experimental.pallas import tpu as pltpu


def _round_up(x, m):
    return ((x + m - 1) // m) * m


def _embed_kernel(x_ref, w_ref, pb_ref, o_ref):
    # x: (tm, Kp), w: (Kp, Dp), pb: (tm, Dp) pos-embed + conv-bias, o: (tm, Dp)
    acc = jnp.dot(x_ref[...], w_ref[...], preferred_element_type=jnp.float32)
    o_ref[...] = (acc + pb_ref[...].astype(jnp.float32)).astype(o_ref.dtype)


def patch_embed_pallas(patches_btk, weight_kd, posbias_td, *, tm, out_dtype,
                       vmem_limit_bytes):
    """out[b, t, :] = patches[b, t, :] @ W + posbias[t, :]  -> (B, T_pad, D_pad).

    patches_btk : (B, T_pad, K_pad)  pre-patchified pixels (K zero-padded)
    weight_kd   : (K_pad, D_pad)     conv weight as matmul operand
    posbias_td  : (T_pad, D_pad)     pos-embed with conv bias folded in
    """
    B, T_pad, Kp = patches_btk.shape
    Dp = weight_kd.shape[1]
    assert T_pad % tm == 0, "token padding must make T a multiple of the tile"
    n_tiles = T_pad // tm
    token_major = n_tiles > 1  # keep leading parallel axis non-degenerate

    if token_major:
        # Batch innermost: posbias block index is constant across consecutive
        # steps -> Pallas skips its re-DMA (posbias traffic T*D, not B*T*D).
        grid = (n_tiles, B)
        x_map = lambda i, b: (b, i, 0)
        w_map = lambda i, b: (0, 0)
        pb_map = lambda i, b: (i, 0)
        o_map = lambda i, b: (b, i, 0)
    else:
        grid = (B, n_tiles)
        x_map = lambda b, i: (b, i, 0)
        w_map = lambda b, i: (0, 0)
        pb_map = lambda b, i: (i, 0)
        o_map = lambda b, i: (b, i, 0)

    return pl.pallas_call(
        _embed_kernel,
        out_shape=jax.ShapeDtypeStruct((B, T_pad, Dp), out_dtype),
        grid_spec=pltpu.PrefetchScalarGridSpec(
            num_scalar_prefetch=0,
            grid=grid,
            in_specs=[
                # batch dim squeezed out of the kernel view
                pl.BlockSpec((None, tm, Kp), x_map),
                # full weight, resident across the whole grid; single-buffered
                pl.BlockSpec((Kp, Dp), w_map, pipeline_mode=pl.Buffered(1)),
                # pos+bias: indexed by token tile only -> no batch broadcast
                pl.BlockSpec((tm, Dp), pb_map),
            ],
            out_specs=pl.BlockSpec((None, tm, Dp), o_map),
        ),
        compiler_params=pltpu.CompilerParams(
            dimension_semantics=("parallel", "parallel"),
            vmem_limit_bytes=int(vmem_limit_bytes),
        ),
    )(patches_btk, weight_kd, posbias_td)


class VisionEmbeddingsJax:
    """JAX/Pallas port of VisionEmbeddings (deterministic synthetic init)."""

    VMEM_CAP_BYTES = 48 * 1024 * 1024  # safe under v7x's 64 MiB physical VMEM

    def __init__(self, key, *, hidden_size, image_size, patch_size,
                 num_channels, compute_dtype=jnp.bfloat16, tm_max=512):
        self.embed_dim = hidden_size
        self.image_size = image_size
        self.patch_size = patch_size
        self.num_channels = num_channels
        self.num_patches = (image_size // patch_size) ** 2
        self.num_positions = self.num_patches + 1
        # bf16 operands halve HBM traffic and run the MXU at native bf16 rate;
        # accumulation stays f32 inside the kernel. Pass jnp.float32 for
        # bit-tighter numerics.
        self.compute_dtype = compute_dtype
        self.tm_max = tm_max

        D = hidden_size
        K = num_channels * patch_size * patch_size
        self.K = K
        self.K_pad = _round_up(K, 128)
        self.D_pad = _round_up(D, 128)

        k_cls, k_pos, k_w = jax.random.split(key, 3)
        self.class_embedding = jax.random.normal(
            k_cls, (1, 1, D), dtype=jnp.float32)
        self.position_embedding = jax.random.normal(
            k_pos, (1, self.num_positions, D), dtype=jnp.float32)
        # Conv2d weight: normal(0, 0.02), shape (D, C, p, p); bias zeros.
        self.conv_w = 0.02 * jax.random.normal(
            k_w, (D, num_channels, patch_size, patch_size), dtype=jnp.float32)
        self.conv_b = jnp.zeros((D,), dtype=jnp.float32)

        # Cached matmul operand: conv weight as (K_pad, D_pad) in compute dtype.
        w_kd = jnp.pad(self.conv_w.reshape(D, K).T,
                       ((0, self.K_pad - K), (0, self.D_pad - D)))
        self._w_kd = w_kd.astype(self.compute_dtype)

        # Cached native-resolution posbias (T_native, D_pad), compute dtype.
        self._grid_native = image_size // patch_size
        self._posbias_native = self._make_posbias(self._grid_native,
                                                  self._grid_native)

    def _get_pos_embed(self, pos_embed, H, W):
        # pos_embed: (1, grid*grid, D)
        grid = self.image_size // self.patch_size
        if (H, W) == (grid, grid):
            # F.interpolate to the same size is the identity mapping.
            return pos_embed
        # TODO(synk): PyTorch bicubic uses a=-0.75; jax.image.resize 'bicubic'
        # uses Keys a=-0.5, so off-resolution inputs differ slightly.
        p = pos_embed.reshape(1, grid, grid, -1)
        p = jax.image.resize(p, (1, H, W, p.shape[-1]), method="bicubic")
        return p.reshape(1, H * W, -1)

    def _make_posbias(self, Hp, Wp):
        # pos-embed for (Hp, Wp) grid with conv bias folded in, D padded to 128.
        D = self.embed_dim
        pos = self._get_pos_embed(self.position_embedding[:, 1:, :], Hp, Wp)
        pb = pos.reshape(Hp * Wp, D).astype(jnp.float32) + self.conv_b[None, :]
        pb = jnp.pad(pb, ((0, 0), (0, self.D_pad - D)))
        return pb.astype(self.compute_dtype)

    def _choose_tile(self, T, out_itemsize):
        """Biggest row tile (multiple of 8, <= tm_max) fitting the VMEM cap."""
        x_item = jnp.dtype(self.compute_dtype).itemsize
        Kp, Dp = self.K_pad, self.D_pad
        tm = min(self.tm_max, _round_up(T, 8))
        while True:
            vmem_est = (2 * tm * Kp * x_item          # double-buffered x tiles
                        + Kp * Dp * x_item            # single-buffered weight
                        + 2 * tm * Dp * x_item        # double-buffered posbias
                        + 2 * tm * Dp * out_itemsize  # double-buffered out
                        + (2 << 20))                  # headroom
            if vmem_est <= self.VMEM_CAP_BYTES or tm <= 8:
                return tm, vmem_est
            tm = max(8, _round_up(tm // 2, 8))

    def __call__(self, pixel_values, use_cls_token=False):
        target_dtype = self.conv_w.dtype  # matches PyTorch parameter dtype
        pixel_values = pixel_values.astype(target_dtype)
        B, C, H, W = pixel_values.shape
        p = self.patch_size
        Hp, Wp = H // p, W // p
        D = self.embed_dim
        K, Kp, Dp = self.K, self.K_pad, self.D_pad
        T = Hp * Wp

        tm, vmem_est = self._choose_tile(T, jnp.dtype(target_dtype).itemsize)
        T_pad = _round_up(T, tm)

        # Patchify (glue copy): (B,C,H,W) -> (B, T_pad, K_pad) in compute dtype.
        # TODO(synk): fold the patchify into the kernel (pixel BlockSpec plus
        # in-VMEM rearrangement) to remove this HBM round trip of activations.
        x = pixel_values.reshape(B, C, Hp, p, Wp, p)
        x = x.transpose(0, 2, 4, 1, 3, 5).reshape(B, T, K)
        x = jnp.pad(x, ((0, 0), (0, T_pad - T), (0, Kp - K)))
        x = x.astype(self.compute_dtype)

        # posbias (pos-embed + folded conv bias); cached for native resolution.
        if (Hp, Wp) == (self._grid_native, self._grid_native):
            posbias = self._posbias_native
        else:
            posbias = self._make_posbias(Hp, Wp)
        posbias = jnp.pad(posbias, ((0, T_pad - T), (0, 0)))

        # Hot path: fused patch-matmul + pos/bias add in Pallas.
        out = patch_embed_pallas(
            x, self._w_kd, posbias, tm=tm, out_dtype=target_dtype,
            vmem_limit_bytes=max(int(vmem_est), 32 * 1024 * 1024))
        embeddings = out[:, :T, :D]

        if use_cls_token:
            # Tiny single-token path kept in plain JAX (glue).
            cls = (self.class_embedding.astype(target_dtype)
                   + self.position_embedding[:, :1, :].astype(target_dtype))
            cls = jnp.broadcast_to(cls, (B, 1, D))
            embeddings = jnp.concatenate([cls, embeddings], axis=1)
        return embeddings


def _reference_forward(mod: VisionEmbeddingsJax, pixel_values, use_cls_token=False):
    """Plain-JAX f32 reference mirroring the PyTorch semantics."""
    B, C, H, W = pixel_values.shape
    p = mod.patch_size
    Hp, Wp = H // p, W // p
    D = mod.embed_dim
    patches = jax.lax.conv_general_dilated(
        pixel_values.astype(jnp.float32), mod.conv_w, window_strides=(p, p),
        padding="VALID",
        dimension_numbers=("NCHW", "OIHW", "NCHW")) + mod.conv_b[None, :, None, None]
    patch_embeds = patches.reshape(B, D, Hp * Wp).transpose(0, 2, 1)
    pos = mod._get_pos_embed(mod.position_embedding[:, 1:, :], Hp, Wp)
    emb = patch_embeds + pos
    if use_cls_token:
        cls = jnp.broadcast_to(
            mod.class_embedding + mod.position_embedding[:, :1, :], (B, 1, D))
        emb = jnp.concatenate([cls, emb], axis=1)
    return emb


if __name__ == "__main__":
    key = jax.random.PRNGKey(0)
    k_params, k_pix = jax.random.split(key)

    # Small synthetic config: hidden=32, image=16, patch=4, channels=4, batch=2.
    pixel_values = jax.random.normal(k_pix, (2, 4, 16, 16), dtype=jnp.float32)

    # f32 compute path (tight tolerance; single token tile -> batch-leading grid).
    mod_f32 = VisionEmbeddingsJax(
        k_params, hidden_size=32, image_size=16, patch_size=4, num_channels=4,
        compute_dtype=jnp.float32)
    out = jax.block_until_ready(mod_f32(pixel_values, use_cls_token=False))
    out_cls = jax.block_until_ready(mod_f32(pixel_values, use_cls_token=True))
    ref = jax.block_until_ready(_reference_forward(mod_f32, pixel_values, False))
    ref_cls = jax.block_until_ready(_reference_forward(mod_f32, pixel_values, True))
    assert out.shape == (2, 16, 32) and out_cls.shape == (2, 17, 32)
    assert jnp.allclose(out, ref, atol=1e-4, rtol=1e-4)
    assert jnp.allclose(out_cls, ref_cls, atol=1e-4, rtol=1e-4)

    # bf16 default compute path (looser tolerance); small tm_max forces multiple
    # token tiles so the token-major (posbias-resident) grid path is exercised.
    mod_bf16 = VisionEmbeddingsJax(
        k_params, hidden_size=32, image_size=16, patch_size=4, num_channels=4,
        tm_max=8)
    out_b = jax.block_until_ready(mod_bf16(pixel_values, use_cls_token=False))
    ref_b = jax.block_until_ready(_reference_forward(mod_bf16, pixel_values, False))
    assert out_b.shape == (2, 16, 32)
    assert jnp.allclose(out_b, ref_b, atol=3e-2, rtol=3e-2)

    print("KERNEL_OK")
</pallas_src>

<mosaic_0001>
module attributes {stable_mosaic.version = 11 : i64} {
  func.func @_embed_kernel(%arg0: i32, %arg1: i32, %arg2: memref<1x16x128xf32, #tpu.memory_space<vmem>>, %arg3: memref<128x128xf32, #tpu.memory_space<vmem>>, %arg4: memref<16x128xf32, #tpu.memory_space<vmem>>, %arg5: memref<1x16x128xf32, #tpu.memory_space<vmem>>) attributes {dimension_semantics = [#tpu.dimension_semantics<parallel>, #tpu.dimension_semantics<parallel>], iteration_bounds = array<i64: 2, 1>, scalar_prefetch = 0 : i64, scratch_operands = 0 : i64, tpu.core_type = #tpu.core_type<tc>, window_params = [{transform_indices = @transform_0, window_bounds = array<i64: 1, 16, 128>}, {pipeline_mode = #tpu.pipeline_mode<synchronous>, transform_indices = @transform_1, window_bounds = array<i64: 128, 128>}, {transform_indices = @transform_2, window_bounds = array<i64: 16, 128>}, {transform_indices = @transform_3, window_bounds = array<i64: 1, 16, 128>}]} {
    %c0 = arith.constant 0 : index
    %c0_0 = arith.constant 0 : index
    %c0_1 = arith.constant 0 : index
    %0 = vector.load %arg2[%c0, %c0_0, %c0_1] : memref<1x16x128xf32, #tpu.memory_space<vmem>>, vector<1x16x128xf32>
    %1 = vector.shape_cast %0 : vector<1x16x128xf32> to vector<16x128xf32>
    %c0_2 = arith.constant 0 : index
    %c0_3 = arith.constant 0 : index
    %2 = vector.load %arg3[%c0_2, %c0_3] : memref<128x128xf32, #tpu.memory_space<vmem>>, vector<128x128xf32>
    %cst = arith.constant dense<0.000000e+00> : vector<16x128xf32>
    %3 = tpu.matmul %1, %2, %cst {dimension_numbers = #tpu.dot_dimension_numbers<[1], [0], [0], [1], [0, 0, 1, 1], [], []>} : vector<16x128xf32>, vector<128x128xf32>, vector<16x128xf32> -> vector<16x128xf32>
    %c0_4 = arith.constant 0 : index
    %c0_5 = arith.constant 0 : index
    %4 = vector.load %arg4[%c0_4, %c0_5] : memref<16x128xf32, #tpu.memory_space<vmem>>, vector<16x128xf32>
    %5 = arith.addf %3, %4 : vector<16x128xf32>
    %c0_6 = arith.constant 0 : index
    %c0_7 = arith.constant 0 : index
    %c0_8 = arith.constant 0 : index
    %6 = vector.load %arg5[%c0_6, %c0_7, %c0_8] : memref<1x16x128xf32, #tpu.memory_space<vmem>>, vector<1x16x128xf32>
    %7 = vector.shape_cast %6 : vector<1x16x128xf32> to vector<16x128xf32>
    %8 = vector.shape_cast %5 : vector<16x128xf32> to vector<1x16x128xf32>
    tpu.vector_store %arg5[%c0_6, %c0_7, %c0_8], %8 {strides = array<i32>} : memref<1x16x128xf32, #tpu.memory_space<vmem>>, vector<1x16x128xf32>,
    return
  }
  func.func @transform_0(%arg0: i32, %arg1: i32) -> (i32, i32, i32) {
    %c0_i32 = arith.constant 0 : i32
    %c0_i32_0 = arith.constant 0 : i32
    return %arg0, %arg1, %c0_i32 : i32, i32, i32
  }
  func.func @transform_1(%arg0: i32, %arg1: i32) -> (i32, i32) {
    %c0_i32 = arith.constant 0 : i32
    %c0_i32_0 = arith.constant 0 : i32
    %c0_i32_1 = arith.constant 0 : i32
    return %c0_i32, %c0_i32_0 : i32, i32
  }
  func.func @transform_2(%arg0: i32, %arg1: i32) -> (i32, i32) {
    %c0_i32 = arith.constant 0 : i32
    %c0_i32_0 = arith.constant 0 : i32
    return %arg1, %c0_i32 : i32, i32
  }
  func.func @transform_3(%arg0: i32, %arg1: i32) -> (i32, i32, i32) {
    %c0_i32 = arith.constant 0 : i32
    %c0_i32_0 = arith.constant 0 : i32
    return %arg0, %arg1, %c0_i32 : i32, i32, i32
  }
}

</mosaic_0001>

<bundles_post_ra>
// kernel: tpu_custom_call.1
= control target key start
LH: loop header
LB: loop body
LE: loop exit
PB: predicated region body
PF: predicated region fallthrough
CT: control target
= control target key end

     0   :  { %8 = vsyncpa [#allocation3], 0  ;;  %s915_s0 = inlined_call_operand.hbm [shape: f32[2,16,128], index: 0, kind: input, shape index: {}]   ;;  %s916_s1 = inlined_call_operand.hbm [shape: f32[128,128], index: 1, kind: input, shape index: {}]   ;;  %s917_s2 = inlined_call_operand.hbm [shape: f32[16,128], index: 2, kind: input, shape index: {}]   ;;  %s918_s3 = inlined_call_operand.hbm [shape: f32[2,16,128], index: 3, kind: output, shape index: {}]  }
   0x1   :  { %10 = vsyncpa [#allocation3 + $0x1], 0 }
   0x2   :  { %11 = vsyncpa [#allocation6], 0 }
   0x3   :  { %12 = vsyncpa [#allocation4], 0 }
   0x4   :  { %14 = vsyncpa [#allocation4 + $0x1], 0  ;;  %s752_s12 = smov 0   ;;  %s754_s13 = smov 0  }
   0x5   :  { %s756_s14 = smov 0   ;;  %s758_s15 = smov 0  }
   0x6   :  { %s760_s16 = smov 0   ;;  %s762_s17 = smov 0  }
   0x7 LB: > { %s424_s18 = sadd.s32 4294967295, %s724_s17   ;;  %s425_s19 = sadd.s32 4294967294, %s724_s17   ;;  %s724_s17 = sphi %s762_s17, %s20_s17   ;;  %s720_s16 = sphi %s760_s16, %s928_s16   ;;  %s716_s15 = sphi %s758_s15, %s927_s15   ;;  %s712_s14 = sphi %s756_s14, %s926_s14   ;;  %s708_s13 = sphi %s754_s13, %s925_s13   ;;  %s704_s12 = sphi %s752_s12, %s924_s12  }
   0x8   : > { %p54_p0 = scmp.ne.s32.totalorder %s708_s13, %s704_s12  ;;  %p788_p1 = scmp.eq.s32.totalorder %s424_s18, 0 }
   0x9   : > { %p133_p2 = scmp.eq.s32.totalorder %s425_s19, 1  ;;  %p426_p4 = scmp.ge.s32.totalorder %s724_s17, 1 }
   0xa   : > { %p794_p3 = por %p788_p1, %p54_p0  ;;  %p140_p6 = scmp.lt.s32.totalorder %s724_s17, 3 }
   0xb   : > { %p799_p5 = por %p133_p2, %p54_p0  ;;  %s151_s25 = sshll.u32 %s916_s1, 4  ;;  %s152_s25 = int_to_ptr.hbm [resolvable:$true] %s151_s25 }
   0xc   : > { %p807_p7 = pnand %p426_p4, %p140_p6  ;;  %s726_s27 = smov [#allocation5]  }
   0xd   : > { %s153_s28 = sshll.u32 %s726_s27, 4  ;;  %p429_p10 = scmp.ge.s32.totalorder %s724_s17, 2  ;;  %s154_s28 = int_to_ptr.vmem [resolvable:$true] %s153_s28 }
   0xe   : > { %p473_p8 = pneg %p807_p7  ;;  %s168_s4 = sshll.u32 %s917_s2, 4  ;;  %s169_s4 = int_to_ptr.hbm [resolvable:$true] %s168_s4 }
   0xf   : > { %s727_s5 = smov 128   ;;  %s728_s6 = smov 8  }
  0x10   : > { %p474_p9 = pnand %p473_p8, %p788_p1  ;;  %s729_s7 = smov [#allocation7]  }
  0x11   : > { %s170_s8 = sshll.u32 %s729_s7, 4  ;;  %p127_p11 = scmp.eq.s32.totalorder %s424_s18, 1  ;;  %s171_s8 = int_to_ptr.vmem [resolvable:$true] %s170_s8 }
  0x12   : > { %476 = dma.hbm_to_vmem [thread:$0]  (!%p474_p9), %s152_s25, 2048, %s154_s28, [#allocation6], %s727_s5, %s727_s5, %s728_s6  }
  0x13   : > { %479 = dma.hbm_to_vmem [thread:$0]  (!%p474_p9), %s169_s4, 256, %s171_s8, [#allocation6], %s727_s5, %s727_s5, %s728_s6  }
  0x14   : > { %s32_s9 = sadd.s32 1, %s720_s16  ;;  %s41_s10 = sadd.s32 1, %s712_s14 }
  0x15   : > { %p34_p12 = scmp.ge.s32.totalorder %s32_s9, 2  ;;  %p48_p13 = scmp.ne.s32.totalorder %s712_s14, %s708_s13 }
  0x16   : > { %p49_p0 = scmp.eq.s32.totalorder %s724_s17, 0  ;;  %p490_p4 = scmp.lt.s32.totalorder %s724_s17, 2 }
  0x17   : > { %s930_s9 = smov (%p34_p12, %s32_s9), 0  ;;  %p834_p2 = por %p127_p11, %p48_p13 }
  0x18   : > { %s36_s19 = ssub.s32 %s720_s16, %s930_s9  ;;  %s184_s23 = sand.u32 1, %s712_s14  }
  0x19   : > { %p39_p6 = scmp.eq.s32.totalorder %s36_s19, 0  ;;  %p50_p8 = por %p49_p0, %p48_p13 }
  0x1a   : > { %s430_s24 = sshll.u32 %s184_s23, 4  ;;  %s443_s18 = sshll.u32 %s720_s16, 4 }
  0x1b   : > { %s844_s25 = scalar_select %p39_p6, %s712_s14, %s41_s10  }
  0x1c   : > { %s195_s29 = scalar_lea.hbm %s915_s0, %s443_s18  ;;  %s188_s4 = scalar_lea.vmem [#allocation2], %s430_s24 }
  0x1d   : > { %s196_s30 = sshll.u32 %s195_s29, 4  ;;  %s198_s7 = sshll.u32 %s188_s4, 4  ;;  %s197_s30 = int_to_ptr.hbm [resolvable:$true] %s196_s30  ;;  %s199_s7 = int_to_ptr.vmem [resolvable:$true] %s198_s7 }
  0x1e   : > { %p481_p9 = pnand %p490_p4, %p50_p8  ;;  %s185_s8 = scalar_lea.sflag [#allocation3], %s184_s23 }
  0x1f   : > { %210 = sbr.rel (%p807_p7) target bundleno = 204 (0xcc), region = 32  ;;  %s857_s10 = sand.u32 (!%p807_p7), 1, %s708_s13  }
  0x20   : > { %483 = dma.hbm_to_vmem [thread:$0]  (!%p481_p9), %s197_s30, 256, %s199_s7, %s185_s8, %s727_s5, %s727_s5, %s728_s6  }
  0x21   : > { %s434_s19 = sshll.u32 (!%p807_p7), %s857_s10, 4  ;;  %s213_s24 = scalar_lea.sflag (!%p807_p7), [#allocation3], %s857_s10 }
  0x22   : > { %s863_s18 = scalar_lea.vmem (!%p807_p7), [#allocation2], %s434_s19 }
  0x24   : > { %691 = dma.done.wait (%p794_p3), %s213_s24, 256  }
  0x25   : > { %693 = vsyncadd (%p794_p3), %s213_s24, 4294967040 }
  0x26   : > { %695 = dma.done.wait (%p788_p1), [#allocation6], 2304  }
  0x27   : > { %697 = vsyncadd (%p788_p1), [#allocation6], 4294964992  ;;  %v270_v0 = vld [vmem:[#allocation5 + $0x78] sm:$0xff]  ;;  %v269_v1 = vld [vmem:[#allocation5 + $0x70] sm:$0xff]  ;;  %s444_s20 = sshll.u32 %s716_s15, 4  ;;  %s249_s6 = scalar_lea.vmem [#allocation8], %s434_s19 }
  0x28   : > { %273 = vmatpush.msra.mxu0 %v270_v0  ;;  %445 = vmatpush.msra.mxu1 %v270_v0  ;;  %v268_v2 = vld [vmem:[#allocation5 + $0x68] sm:$0xff]  ;;  %v267_v3 = vld [vmem:[#allocation5 + $0x60] sm:$0xff]  ;;  %v266_v4 = vld [vmem:[#allocation5 + $0x58] sm:$0xff]  ;;  %s312_s5 = scalar_lea.hbm %s918_s3, %s444_s20  ;;  %s313_s23 = sshll.u32 %s249_s6, 4  ;;  %s314_s23 = int_to_ptr.vmem [resolvable:$true] %s313_s23 }
  0x29   : > { %v265_v5 = vld [vmem:[#allocation5 + $0x50] sm:$0xff]  ;;  %v264_v6 = vld [vmem:[#allocation5 + $0x48] sm:$0xff]  ;;  %v263_v7 = vld [vmem:[#allocation5 + $0x40] sm:$0xff]  ;;  %s315_s27 = sshll.u32 %s312_s5, 4  ;;  %s299_s15 = scalar_lea.sflag [#allocation4], %s857_s10  ;;  %s316_s27 = int_to_ptr.hbm [resolvable:$true] %s315_s27 }
  0x2a   : > { %274 = vmatpush.msra.mxu0 %v269_v1  ;;  %446 = vmatpush.msra.mxu1 %v269_v1  ;;  %v262_v8 = vld [vmem:[#allocation5 + $0x38] sm:$0xff]  ;;  %v261_v9 = vld [vmem:[#allocation5 + $0x30] sm:$0xff]  ;;  %v260_v10 = vld [vmem:[#allocation5 + $0x28] sm:$0xff]  ;;  %s652_s28 = sshra.s32 %s316_s27, 4  ;;  %s658_s7 = scalar_lea.hbm %s918_s3, 32  ;;  %s653_s28 = int_to_ptr.hbm [resolvable:$true] %s652_s28 }
  0x2b   : > { %v259_v11 = vld [vmem:[#allocation5 + $0x20] sm:$0xff]  ;;  %v258_v12 = vld [vmem:[#allocation5 + $0x18] sm:$0xff]  ;;  %v257_v13 = vld [vmem:[#allocation5 + $0x10] sm:$0xff]  ;;  %s654_s29 = scalar_lea.hbm %s653_s28, 16  ;;  %p659_p11 = scmp.lt.s32.totalorder %s653_s28, %s918_s3 }
  0x2c   : > { %275 = vmatpush.msra.mxu0 %v268_v2  ;;  %447 = vmatpush.msra.mxu1 %v268_v2  ;;  %v256_v14 = vld [vmem:[#allocation5 + $0x8] sm:$0xff]  ;;  %v255_v15 = vld [vmem:[#allocation5] sm:$0xff]  ;;  %p655_p1 = scmp.ne.s32.totalorder %s653_s28, %s654_s29  ;;  %p660_p12 = scmp.lt.s32.totalorder %s658_s7, %s654_s29 }
  0x2d   : > { %v253_v16 = vld [vmem:[%s863_s18] sm:$0xff]  ;;  %v254_v17 = vld [vmem:[%s863_s18 + $0x8] sm:$0xff] }
  0x2e   : > { %276 = vmatpush.msra.mxu0 %v267_v3  ;;  %448 = vmatpush.msra.mxu1 %v267_v3  ;;  %v271_v18 = vld [vmem:[#allocation7] sm:$0xff]  ;;  %v272_v19 = vld [vmem:[#allocation7 + $0x8] sm:$0xff]  ;;  %p656_p3 = pnand %p655_p1, %p834_p2  ;;  %p661_p13 = por %p660_p12, %p659_p11 }
  0x30   : > { %277 = vmatpush.msra.mxu0 %v266_v4  ;;  %449 = vmatpush.msra.mxu1 %v266_v4  ;;  %p657_p7 = pneg %p656_p3 }
  0x32   : > { %278 = vmatpush.msra.mxu0 %v265_v5  ;;  %450 = vmatpush.msra.mxu1 %v265_v5  ;;  %p662_p0 = pnand %p661_p13, %p657_p7 }
  0x34   : > { %279 = vmatpush.msra.mxu0 %v264_v6  ;;  %451 = vmatpush.msra.mxu1 %v264_v6 }
  0x36   : > { %280 = vmatpush.msra.mxu0 %v263_v7  ;;  %452 = vmatpush.msra.mxu1 %v263_v7 }
  0x38   : > { %281 = vmatpush.msra.mxu0 %v262_v8  ;;  %453 = vmatpush.msra.mxu1 %v262_v8 }
  0x3a   : > { %282 = vmatpush.msra.mxu0 %v261_v9  ;;  %454 = vmatpush.msra.mxu1 %v261_v9 }
  0x3c   : > { %283 = vmatpush.msra.mxu0 %v260_v10  ;;  %455 = vmatpush.msra.mxu1 %v260_v10 }
  0x3e   : > { %284 = vmatpush.msra.mxu0 %v259_v11  ;;  %456 = vmatpush.msra.mxu1 %v259_v11 }
  0x40   : > { %285 = vmatpush.msra.mxu0 %v258_v12  ;;  %457 = vmatpush.msra.mxu1 %v258_v12 }
  0x42   : > { %286 = vmatpush.msra.mxu0 %v257_v13  ;;  %458 = vmatpush.msra.mxu1 %v257_v13 }
  0x44   : > { %287 = vmatpush.msra.mxu0 %v256_v14  ;;  %459 = vmatpush.msra.mxu1 %v256_v14 }
  0x46   : > { %288 = vmatpush.msra.mxu0 %v255_v15  ;;  %460 = vmatpush.msra.mxu1 %v255_v15 }
  0x47   : > { %289 = vmatmul.f32.vlgmr.msra.gmra.mxu0 %v253_v16  ;;  %292 = vmatmul.f32.vlgmr.msra.gmra.mxu1 %v254_v17 }
  0xc4   : > { %v290_v20 = vpop.f32.mrf.mxu0  ;;  %v293_v21 = vpop.f32.mrf.mxu1 }
  0xc5   : > { %v291_v22 = vadd.f32 %v290_v20, %v271_v18  ;;  %v294_v23 = vadd.f32 %v293_v21, %v272_v19 }
  0xc7   : > { %296 = vst [vmem:[%s249_s6] sm:$0xff] %v291_v22 }
  0xc8   : > { %297 = vst [vmem:[%s249_s6 + $0x8] sm:$0xff] %v294_v23 }
  0xc9   : > { %665 = shalt.err (!%p662_p0)
}
  0xca   : > { %s730_s10 = smov 128   ;;  %s731_s24 = smov 8  }
  0xcb   : > { %471 = dma.vmem_to_hbm [thread:$0]  (%p834_p2), %s314_s23, 256, %s316_s27, %s299_s15, %s730_s10, %s730_s10, %s731_s24  }
  0xcc PF: > { %s330_s18 = sand.u32 1, %s704_s12   ;;  %p485_p4 = pnand %p429_p10, %p799_p5 }
  0xcd   : > { %s331_s20 = scalar_lea.sflag [#allocation4], %s330_s18 }
  0xce   : > { %p486_p6 = pneg %p485_p4 }
  0xd0   : > { %699 = dma.done.wait (%p486_p6), %s331_s20, 256  }
  0xd1   : > { %701 = vsyncadd (%p486_p6), %s331_s20, 4294967040  ;;  %s20_s17 = sadd.s32 1, %s724_s17   ;;  %s924_s12 = smov %s708_s13 }
  0xd2   : > { %p17_p8 = scmp.ge.s32.totalorder %s20_s17, 4   ;;  %s925_s13 = smov %s712_s14 }
  0xd3   : > { %s926_s14 = smov %s844_s25  ;;  %s927_s15 = smov %s720_s16 }
  0xd4   : > { %s928_s16 = smov %s930_s9  ;;  %19 = sbr.rel (!%p17_p8) target bundleno = 7 (0x7), region = 86 }
  0xd9   :  { %337 = vsyncpa [#allocation3], 1 }
  0xda   :  { %339 = vsyncpa [#allocation3 + $0x1], 1 }
  0xdb   :  { %340 = vsyncpa [#allocation6], 1 }
  0xdc   :  { %341 = vsyncpa [#allocation4], 1 }
  0xdd   :  { %343 = vsyncpa [#allocation4 + $0x1], 1 }

</bundles_post_ra>
